<compile_context>
chip_gen: v7x
topology: tpu7x:2x2x1
jax: 0.10.0
libtpu: 0.0.40
codegen_flags: <defaults>
</compile_context>

<pallas_src>
import math
import functools

import jax
import jax.numpy as jnp
from jax import lax
from jax.experimental import pallas as pl
from jax.experimental.pallas import tpu as pltpu

LANE = 128


def _round_up(n, m):
    return ((n + m - 1) // m) * m


# ----------------------------------------------------------------------------
# Shared in-kernel helper: conv-as-matmul + bias + ReLU + global average pool
# for one batch element.
#   patch : (P, Kp) bf16, conv_w : (Kp, Fp) bf16, conv_b : (1, Fp) f32
#   -> (1, Fp) f32 feature row
# ----------------------------------------------------------------------------
def _feature_row(patch, conv_w, conv_b):
    h = jnp.dot(patch, conv_w, preferred_element_type=jnp.float32)   # MXU, f32 acc
    h = jnp.maximum(h + conv_b, 0.0)                                  # bias + ReLU
    return jnp.mean(h, axis=0, keepdims=True)                         # GAP -> (1, Fp)


# ----------------------------------------------------------------------------
# Fused kernel 1: features + ArcMarginProduct head (use_arcface=True)
# ----------------------------------------------------------------------------
def _fused_arcface_kernel(label_ref, patch_ref, convw_ref, convb_ref, arcw_ref,
                          out_ref, wn_ref, *, s, cos_m, sin_m, th, mm):
    b = pl.program_id(0)

    # Row-normalize the class weights once; keep them resident as bf16 MXU input.
    @pl.when(b == 0)
    def _():
        w = arcw_ref[...]                                             # (Cp, Fp) f32
        ssq = jnp.sum(w * w, axis=1, keepdims=True)
        wn_ref[...] = (w * lax.rsqrt(jnp.maximum(ssq, 1e-24))).astype(jnp.bfloat16)

    feat = _feature_row(patch_ref[0], convw_ref[...], convb_ref[...])  # (1, Fp) f32

    # F.normalize on the feature row (f32 math, EUP rsqrt), bf16 only for the MXU.
    ssq = jnp.sum(feat * feat, axis=1, keepdims=True)
    f_n = (feat * lax.rsqrt(jnp.maximum(ssq, 1e-24))).astype(jnp.bfloat16)

    # cosine = f_n @ w_n^T  without an in-kernel transpose.
    cosine = lax.dot_general(f_n, wn_ref[...], (((1,), (1,)), ((), ())),
                             preferred_element_type=jnp.float32)      # (1, Cp) f32

    sine = jnp.sqrt(jnp.clip(1.0 - cosine * cosine, 0.0, 1.0))
    phi = cosine * cos_m - sine * sin_m
    phi = jnp.where(cosine > th, phi, cosine - mm)                     # easy_margin=False

    lbl = label_ref[b]                                                 # SMEM scalar read
    one_hot = (lax.broadcasted_iota(jnp.int32, cosine.shape, 1) == lbl
               ).astype(jnp.float32)                                   # scatter_ -> one hot
    out_ref[0] = s * (one_hot * phi + (1.0 - one_hot) * cosine)


def arcface_forward(patches, conv_w, conv_b, arc_w, labels, num_classes,
                    s=30.0, m=0.5):
    B, P, Kp = patches.shape
    Fp = conv_w.shape[1]
    Cp = arc_w.shape[0]
    kernel = functools.partial(
        _fused_arcface_kernel,
        s=float(s), cos_m=math.cos(m), sin_m=math.sin(m),
        th=math.cos(math.pi - m), mm=math.sin(math.pi - m) * m)
    out = pl.pallas_call(
        kernel,
        out_shape=jax.ShapeDtypeStruct((B, 1, Cp), jnp.float32),
        grid_spec=pltpu.PrefetchScalarGridSpec(
            num_scalar_prefetch=1,                    # labels -> SMEM
            grid=(B,),
            in_specs=[
                pl.BlockSpec((1, P, Kp), lambda b, lbl: (b, 0, 0)),
                pl.BlockSpec((Kp, Fp), lambda b, lbl: (0, 0)),
                pl.BlockSpec((1, Fp), lambda b, lbl: (0, 0)),
                pl.BlockSpec((Cp, Fp), lambda b, lbl: (0, 0)),
            ],
            out_specs=pl.BlockSpec((1, 1, Cp), lambda b, lbl: (b, 0, 0)),
            scratch_shapes=[pltpu.VMEM((Cp, Fp), jnp.bfloat16)],
        ),
        # "arbitrary": the normalized-weight scratch is initialized at step 0 and
        # reused by later steps, so the batch axis must run sequentially.
        compiler_params=pltpu.CompilerParams(dimension_semantics=("arbitrary",)),
    )(labels, patches, conv_w, conv_b, arc_w)
    return out.reshape(B, Cp)[:, :num_classes]


# ----------------------------------------------------------------------------
# Fused kernel 2: features + plain nn.Linear head (use_arcface=None path)
# ----------------------------------------------------------------------------
def _fused_linear_kernel(patch_ref, convw_ref, convb_ref, linw_ref, linb_ref,
                         out_ref):
    feat = _feature_row(patch_ref[0], convw_ref[...], convb_ref[...])  # (1, Fp) f32
    logits = lax.dot_general(feat.astype(jnp.bfloat16), linw_ref[...],
                             (((1,), (1,)), ((), ())),
                             preferred_element_type=jnp.float32) + linb_ref[...]
    out_ref[0] = logits


def linear_forward(patches, conv_w, conv_b, lin_w, lin_b, num_classes):
    B, P, Kp = patches.shape
    Fp = conv_w.shape[1]
    Cp = lin_w.shape[0]
    out = pl.pallas_call(
        _fused_linear_kernel,
        out_shape=jax.ShapeDtypeStruct((B, 1, Cp), jnp.float32),
        grid_spec=pltpu.PrefetchScalarGridSpec(
            num_scalar_prefetch=0,
            grid=(B,),
            in_specs=[
                pl.BlockSpec((1, P, Kp), lambda b: (b, 0, 0)),
                pl.BlockSpec((Kp, Fp), lambda b: (0, 0)),
                pl.BlockSpec((1, Fp), lambda b: (0, 0)),
                pl.BlockSpec((Cp, Fp), lambda b: (0, 0)),
                pl.BlockSpec((1, Cp), lambda b: (0, 0)),
            ],
            out_specs=pl.BlockSpec((1, 1, Cp), lambda b: (b, 0, 0)),
        ),
        compiler_params=pltpu.CompilerParams(dimension_semantics=("parallel",)),
    )(patches, conv_w, conv_b, lin_w, lin_b)
    return out.reshape(B, Cp)[:, :num_classes]


# ----------------------------------------------------------------------------
# Glue: im2col (3x3, stride 1, SAME padding) + lane padding in plain JAX
# ----------------------------------------------------------------------------
def im2col_3x3(x_nhwc):
    # TODO(synk): for real image sizes, avoid materializing im2col in HBM (9x
    # read amplification) by gathering the 3x3 window with shifted loads inside
    # the kernel instead.
    B, H, W, C = x_nhwc.shape
    xp = jnp.pad(x_nhwc, ((0, 0), (1, 1), (1, 1), (0, 0)))
    pieces = [xp[:, di:di + H, dj:dj + W, :] for di in range(3) for dj in range(3)]
    patches = jnp.concatenate(pieces, axis=-1)                 # (B, H, W, 9*C)
    return patches.reshape(B, H * W, 9 * C)


def _pad_last(x, target):
    cfg = [(0, 0)] * (x.ndim - 1) + [(0, target - x.shape[-1])]
    return jnp.pad(x, cfg)


def _pad_2d(x, rows, cols):
    return jnp.pad(x, ((0, rows - x.shape[0]), (0, cols - x.shape[1])))


# ----------------------------------------------------------------------------
# End-to-end Model.forward
# ----------------------------------------------------------------------------
def model_forward(x_nchw, label, params, num_classes, use_arcface=True):
    x_nhwc = jnp.transpose(x_nchw, (0, 2, 3, 1))               # NCHW -> NHWC
    patches = im2col_3x3(x_nhwc)                                # (B, P, K)
    Kp = _round_up(patches.shape[-1], LANE)
    Fp = _round_up(params["conv_w"].shape[1], LANE)
    Cp = _round_up(num_classes, LANE)

    patches = _pad_last(patches, Kp).astype(jnp.bfloat16)       # lane-dense bf16 MXU input
    conv_w = _pad_2d(params["conv_w"], Kp, Fp).astype(jnp.bfloat16)
    conv_b = _pad_2d(params["conv_b"], 1, Fp)                   # f32

    if use_arcface:
        arc_w = _pad_2d(params["arc_w"], Cp, Fp)                # f32; normalized in-kernel
        return arcface_forward(patches, conv_w, conv_b, arc_w,
                               label.astype(jnp.int32), num_classes)
    lin_w = _pad_2d(params["lin_w"], Cp, Fp).astype(jnp.bfloat16)
    lin_b = _pad_2d(params["lin_b"].reshape(1, -1), 1, Cp)      # f32
    return linear_forward(patches, conv_w, conv_b, lin_w, lin_b, num_classes)


# ----------------------------------------------------------------------------
# Pure-JAX reference (same bf16 MXU casts) for a correctness check
# ----------------------------------------------------------------------------
def reference_forward(x_nchw, label, params, num_classes, use_arcface=True,
                      s=30.0, m=0.5):
    x_nhwc = jnp.transpose(x_nchw, (0, 2, 3, 1))
    patches = im2col_3x3(x_nhwc)
    B, P, K = patches.shape
    h = jnp.dot(patches.astype(jnp.bfloat16).reshape(B * P, K),
                params["conv_w"].astype(jnp.bfloat16),
                preferred_element_type=jnp.float32)
    h = jnp.maximum(h + params["conv_b"], 0.0).reshape(B, P, -1)
    feat = jnp.mean(h, axis=1)                                  # (B, F)
    if use_arcface:
        f_n = feat * lax.rsqrt(jnp.maximum(jnp.sum(feat * feat, 1, keepdims=True), 1e-24))
        w = params["arc_w"]
        w_n = w * lax.rsqrt(jnp.maximum(jnp.sum(w * w, 1, keepdims=True), 1e-24))
        cosine = jnp.dot(f_n.astype(jnp.bfloat16), w_n.astype(jnp.bfloat16).T,
                         preferred_element_type=jnp.float32)
        sine = jnp.sqrt(jnp.clip(1.0 - cosine * cosine, 0.0, 1.0))
        cos_m, sin_m = math.cos(m), math.sin(m)
        th, mm = math.cos(math.pi - m), math.sin(math.pi - m) * m
        phi = jnp.where(cosine > th, cosine * cos_m - sine * sin_m, cosine - mm)
        one_hot = jax.nn.one_hot(label, num_classes, dtype=jnp.float32)
        return s * (one_hot * phi + (1.0 - one_hot) * cosine)
    return (jnp.dot(feat.astype(jnp.bfloat16), params["lin_w"].astype(jnp.bfloat16).T,
                    preferred_element_type=jnp.float32) + params["lin_b"])


if __name__ == "__main__":
    key = jax.random.PRNGKey(0)
    k_x, k_cw, k_cb, k_aw, k_lw, k_lb, k_lbl = jax.random.split(key, 7)

    B, Cin, H, W = 2, 3, 16, 16          # small NCHW input
    FEAT = 32                            # feature-extractor output dim ("dims")
    NUM_CLASSES = 10
    KDIM = 9 * Cin                       # 3x3 im2col patch length

    x = jax.random.normal(k_x, (B, Cin, H, W), dtype=jnp.float32)
    label = jax.random.randint(k_lbl, (B,), 0, NUM_CLASSES, dtype=jnp.int32)

    params = {
        "conv_w": jax.random.normal(k_cw, (KDIM, FEAT), jnp.float32) / math.sqrt(KDIM),
        "conv_b": jax.random.normal(k_cb, (1, FEAT), jnp.float32) * 0.01,
        "arc_w": jax.random.normal(k_aw, (NUM_CLASSES, FEAT), jnp.float32)
                 * math.sqrt(2.0 / (NUM_CLASSES + FEAT)),       # xavier_uniform-like scale
        "lin_w": jax.random.normal(k_lw, (NUM_CLASSES, FEAT), jnp.float32)
                 / math.sqrt(FEAT),
        "lin_b": jax.random.normal(k_lb, (NUM_CLASSES,), jnp.float32) * 0.01,
    }

    out_arc = jax.block_until_ready(
        model_forward(x, label, params, NUM_CLASSES, use_arcface=True))
    out_lin = jax.block_until_ready(
        model_forward(x, label, params, NUM_CLASSES, use_arcface=False))

    ref_arc = reference_forward(x, label, params, NUM_CLASSES, use_arcface=True)
    ref_lin = reference_forward(x, label, params, NUM_CLASSES, use_arcface=False)

    assert out_arc.shape == (B, NUM_CLASSES) and out_lin.shape == (B, NUM_CLASSES)
    assert jnp.all(jnp.isfinite(out_arc)) and jnp.all(jnp.isfinite(out_lin))
    assert jnp.allclose(out_arc, ref_arc, atol=1e-1, rtol=1e-1)
    assert jnp.allclose(out_lin, ref_lin, atol=1e-1, rtol=1e-1)
    print("KERNEL_OK")
</pallas_src>

<mosaic_0001>
module attributes {stable_mosaic.version = 11 : i64} {
  func.func @_fused_arcface_kernel(%arg0: i32, %arg1: memref<2xi32, #tpu.memory_space<smem>>, %arg2: memref<1x256x128xbf16, #tpu.memory_space<vmem>>, %arg3: memref<128x128xbf16, #tpu.memory_space<vmem>>, %arg4: memref<1x128xf32, #tpu.memory_space<vmem>>, %arg5: memref<128x128xf32, #tpu.memory_space<vmem>>, %arg6: memref<1x1x128xf32, #tpu.memory_space<vmem>>, %arg7: memref<128x128xbf16, #tpu.memory_space<vmem>>) attributes {dimension_semantics = [#tpu.dimension_semantics<arbitrary>], iteration_bounds = array<i64: 2>, scalar_prefetch = 1 : i64, scratch_operands = 1 : i64, tpu.core_type = #tpu.core_type<tc>, window_params = [{transform_indices = @transform_0, window_bounds = array<i64: 1, 256, 128>}, {pipeline_mode = #tpu.pipeline_mode<synchronous>, transform_indices = @transform_1, window_bounds = array<i64: 128, 128>}, {pipeline_mode = #tpu.pipeline_mode<synchronous>, transform_indices = @transform_2, window_bounds = array<i64: 1, 128>}, {pipeline_mode = #tpu.pipeline_mode<synchronous>, transform_indices = @transform_3, window_bounds = array<i64: 128, 128>}, {transform_indices = @transform_4, window_bounds = array<i64: 1, 1, 128>}]} {
    %c0_i32 = arith.constant 0 : i32
    %0 = arith.cmpi eq, %arg0, %c0_i32 : i32
    %1 = arith.extui %0 : i1 to i32
    %c0_i32_0 = arith.constant 0 : i32
    %2 = arith.cmpi ne, %1, %c0_i32_0 : i32
    scf.if %2 {
      %c0_27 = arith.constant 0 : index
      %c0_28 = arith.constant 0 : index
      %62 = vector.load %arg5[%c0_27, %c0_28] : memref<128x128xf32, #tpu.memory_space<vmem>>, vector<128x128xf32>
      %63 = arith.mulf %62, %62 : vector<128x128xf32>
      %cst_29 = arith.constant dense<0.000000e+00> : vector<128xf32>
      %64 = vector.multi_reduction <add>, %63, %cst_29 [1] : vector<128x128xf32> to vector<128xf32>
      %65 = vector.shape_cast %64 : vector<128xf32> to vector<128x1xf32>
      %cst_30 = arith.constant 1.000000e-24 : f32
      %66 = vector.broadcast %cst_30 : f32 to vector<128x1xf32>
      %67 = arith.maximumf %65, %66 : vector<128x1xf32>
      %68 = math.rsqrt %67 : vector<128x1xf32>
      %69 = vector.broadcast %68 : vector<128x1xf32> to vector<128x128xf32>
      %70 = arith.mulf %62, %69 : vector<128x128xf32>
      %71 = arith.truncf %70 : vector<128x128xf32> to vector<128x128xbf16>
      %c0_31 = arith.constant 0 : index
      %c0_32 = arith.constant 0 : index
      %72 = vector.load %arg7[%c0_31, %c0_32] : memref<128x128xbf16, #tpu.memory_space<vmem>>, vector<128x128xbf16>
      tpu.vector_store %arg7[%c0_31, %c0_32], %71 {strides = array<i32>} : memref<128x128xbf16, #tpu.memory_space<vmem>>, vector<128x128xbf16>,
    } else {
    }
    %c0 = arith.constant 0 : index
    %c0_1 = arith.constant 0 : index
    %c0_2 = arith.constant 0 : index
    %3 = vector.load %arg2[%c0, %c0_1, %c0_2] : memref<1x256x128xbf16, #tpu.memory_space<vmem>>, vector<1x256x128xbf16>
    %4 = vector.shape_cast %3 : vector<1x256x128xbf16> to vector<256x128xbf16>
    %c0_3 = arith.constant 0 : index
    %c0_4 = arith.constant 0 : index
    %5 = vector.load %arg3[%c0_3, %c0_4] : memref<128x128xbf16, #tpu.memory_space<vmem>>, vector<128x128xbf16>
    %c0_5 = arith.constant 0 : index
    %c0_6 = arith.constant 0 : index
    %6 = vector.load %arg4[%c0_5, %c0_6] : memref<1x128xf32, #tpu.memory_space<vmem>>, vector<1x128xf32>
    %cst = arith.constant dense<0.000000e+00> : vector<256x128xf32>
    %7 = tpu.matmul %4, %5, %cst {dimension_numbers = #tpu.dot_dimension_numbers<[1], [0], [0], [1], [0, 0, 1, 1], [], []>} : vector<256x128xbf16>, vector<128x128xbf16>, vector<256x128xf32> -> vector<256x128xf32>
    %8 = vector.broadcast %6 : vector<1x128xf32> to vector<256x128xf32>
    %9 = arith.addf %7, %8 : vector<256x128xf32>
    %cst_7 = arith.constant 0.000000e+00 : f32
    %10 = vector.broadcast %cst_7 : f32 to vector<256x128xf32>
    %11 = arith.maximumf %9, %10 : vector<256x128xf32>
    %cst_8 = arith.constant dense<0.000000e+00> : vector<128xf32>
    %12 = vector.multi_reduction <add>, %11, %cst_8 [0] : vector<256x128xf32> to vector<128xf32>
    %13 = vector.shape_cast %12 : vector<128xf32> to vector<1x128xf32>
    %cst_9 = arith.constant 2.560000e+02 : f32
    %14 = vector.broadcast %cst_9 : f32 to vector<1x128xf32>
    %15 = arith.divf %13, %14 : vector<1x128xf32>
    %16 = arith.mulf %15, %15 : vector<1x128xf32>
    %cst_10 = arith.constant dense<0.000000e+00> : vector<1xf32>
    %17 = vector.multi_reduction <add>, %16, %cst_10 [1] : vector<1x128xf32> to vector<1xf32>
    %18 = vector.shape_cast %17 : vector<1xf32> to vector<1x1xf32>
    %cst_11 = arith.constant 1.000000e-24 : f32
    %19 = vector.broadcast %cst_11 : f32 to vector<1x1xf32>
    %20 = arith.maximumf %18, %19 : vector<1x1xf32>
    %21 = math.rsqrt %20 : vector<1x1xf32>
    %22 = vector.broadcast %21 : vector<1x1xf32> to vector<1x128xf32>
    %23 = arith.mulf %15, %22 : vector<1x128xf32>
    %24 = arith.truncf %23 : vector<1x128xf32> to vector<1x128xbf16>
    %c0_12 = arith.constant 0 : index
    %c0_13 = arith.constant 0 : index
    %25 = vector.load %arg7[%c0_12, %c0_13] : memref<128x128xbf16, #tpu.memory_space<vmem>>, vector<128x128xbf16>
    %cst_14 = arith.constant dense<0.000000e+00> : vector<1x128xf32>
    %26 = tpu.matmul %24, %25, %cst_14 {dimension_numbers = #tpu.dot_dimension_numbers<[1], [1], [0], [0], [0, 0, 1, 0], [], []>} : vector<1x128xbf16>, vector<128x128xbf16>, vector<1x128xf32> -> vector<1x128xf32>
    %27 = arith.mulf %26, %26 : vector<1x128xf32>
    %cst_15 = arith.constant 1.000000e+00 : f32
    %28 = vector.broadcast %cst_15 : f32 to vector<1x128xf32>
    %29 = arith.subf %28, %27 : vector<1x128xf32>
    %cst_16 = arith.constant 0.000000e+00 : f32
    %cst_17 = arith.constant 1.000000e+00 : f32
    %30 = vector.broadcast %cst_16 : f32 to vector<1x128xf32>
    %31 = arith.maximumf %30, %29 : vector<1x128xf32>
    %32 = vector.broadcast %cst_17 : f32 to vector<1x128xf32>
    %33 = arith.minimumf %32, %31 : vector<1x128xf32>
    %34 = math.sqrt %33 : vector<1x128xf32>
    %cst_18 = arith.constant 0.87758255 : f32
    %35 = vector.broadcast %cst_18 : f32 to vector<1x128xf32>
    %36 = arith.mulf %26, %35 : vector<1x128xf32>
    %cst_19 = arith.constant 0.47942555 : f32
    %37 = vector.broadcast %cst_19 : f32 to vector<1x128xf32>
    %38 = arith.mulf %34, %37 : vector<1x128xf32>
    %39 = arith.subf %36, %38 : vector<1x128xf32>
    %cst_20 = arith.constant -0.87758255 : f32
    %40 = vector.broadcast %cst_20 : f32 to vector<1x128xf32>
    %41 = arith.cmpf ogt, %26, %40 : vector<1x128xf32>
    %cst_21 = arith.constant 0.239712775 : f32
    %42 = vector.broadcast %cst_21 : f32 to vector<1x128xf32>
    %43 = arith.subf %26, %42 : vector<1x128xf32>
    %44 = arith.select %41, %39, %43 : vector<1x128xi1>, vector<1x128xf32>
    %45 = arith.index_cast %arg0 : i32 to index
    %46 = memref.load %arg1[%45] : memref<2xi32, #tpu.memory_space<smem>>
    %47 = tpu.iota {dimensions = array<i32: 1>} : vector<1x128xi32>
    %48 = vector.broadcast %46 : i32 to vector<1x128xi32>
    %49 = arith.cmpi eq, %47, %48 : vector<1x128xi32>
    %50 = arith.extui %49 : vector<1x128xi1> to vector<1x128xi32>
    %51 = arith.sitofp %50 : vector<1x128xi32> to vector<1x128xf32>
    %52 = arith.mulf %51, %44 : vector<1x128xf32>
    %cst_22 = arith.constant 1.000000e+00 : f32
    %53 = vector.broadcast %cst_22 : f32 to vector<1x128xf32>
    %54 = arith.subf %53, %51 : vector<1x128xf32>
    %55 = arith.mulf %54, %26 : vector<1x128xf32>
    %56 = arith.addf %52, %55 : vector<1x128xf32>
    %cst_23 = arith.constant 3.000000e+01 : f32
    %57 = vector.broadcast %cst_23 : f32 to vector<1x128xf32>
    %58 = arith.mulf %57, %56 : vector<1x128xf32>
    %c0_24 = arith.constant 0 : index
    %c0_25 = arith.constant 0 : index
    %c0_26 = arith.constant 0 : index
    %59 = vector.load %arg6[%c0_24, %c0_25, %c0_26] : memref<1x1x128xf32, #tpu.memory_space<vmem>>, vector<1x1x128xf32>
    %60 = vector.shape_cast %59 : vector<1x1x128xf32> to vector<1x128xf32>
    %61 = vector.shape_cast %58 : vector<1x128xf32> to vector<1x1x128xf32>
    tpu.vector_store %arg6[%c0_24, %c0_25, %c0_26], %61 {strides = array<i32>} : memref<1x1x128xf32, #tpu.memory_space<vmem>>, vector<1x1x128xf32>,
    return
  }
  func.func @transform_0(%arg0: i32, %arg1: memref<2xi32, #tpu.memory_space<smem>>) -> (i32, i32, i32) {
    %c0_i32 = arith.constant 0 : i32
    %c0_i32_0 = arith.constant 0 : i32
    %c0_i32_1 = arith.constant 0 : i32
    return %arg0, %c0_i32, %c0_i32_0 : i32, i32, i32
  }
  func.func @transform_1(%arg0: i32, %arg1: memref<2xi32, #tpu.memory_space<smem>>) -> (i32, i32) {
    %c0_i32 = arith.constant 0 : i32
    %c0_i32_0 = arith.constant 0 : i32
    %c0_i32_1 = arith.constant 0 : i32
    return %c0_i32, %c0_i32_0 : i32, i32
  }
  func.func @transform_2(%arg0: i32, %arg1: memref<2xi32, #tpu.memory_space<smem>>) -> (i32, i32) {
    %c0_i32 = arith.constant 0 : i32
    %c0_i32_0 = arith.constant 0 : i32
    %c0_i32_1 = arith.constant 0 : i32
    return %c0_i32, %c0_i32_0 : i32, i32
  }
  func.func @transform_3(%arg0: i32, %arg1: memref<2xi32, #tpu.memory_space<smem>>) -> (i32, i32) {
    %c0_i32 = arith.constant 0 : i32
    %c0_i32_0 = arith.constant 0 : i32
    %c0_i32_1 = arith.constant 0 : i32
    return %c0_i32, %c0_i32_0 : i32, i32
  }
  func.func @transform_4(%arg0: i32, %arg1: memref<2xi32, #tpu.memory_space<smem>>) -> (i32, i32, i32) {
    %c0_i32 = arith.constant 0 : i32
    %c0_i32_0 = arith.constant 0 : i32
    %c0_i32_1 = arith.constant 0 : i32
    return %arg0, %c0_i32, %c0_i32_0 : i32, i32, i32
  }
}

</mosaic_0001>

<bundles_post_ra>
// kernel: tpu_custom_call.1
= control target key start
LH: loop header
LB: loop body
LE: loop exit
PB: predicated region body
PF: predicated region fallthrough
CT: control target
= control target key end

     0   :  { %s1890_s0 = inlined_call_operand.hbm [shape: s32[2], index: 0, kind: input, shape index: {}]   ;;  %s1891_s1 = inlined_call_operand.hbm [shape: bf16[2,256,128], index: 1, kind: input, shape index: {}]   ;;  %s1892_s2 = inlined_call_operand.hbm [shape: bf16[128,128], index: 2, kind: input, shape index: {}]   ;;  %s1893_s3 = inlined_call_operand.vmem [shape: f32[1,128], index: 3, kind: input, shape index: {}]   ;;  %s1894_s4 = inlined_call_operand.hbm [shape: f32[128,128], index: 4, kind: input, shape index: {}]   ;;  %s1895_s5 = inlined_call_operand.hbm [shape: f32[2,1,128], index: 5, kind: output, shape index: {}]  }
   0x1   :  { %s1275_s20 = scalar_lea.hbm %s1890_s0, 16 }
   0x2   :  { %p1276_p0 = scmp.ne.s32.totalorder %s1890_s0, %s1275_s20  ;;  %p1279_p1 = scmp.lt.u32.totalorder %s1275_s20, %s1890_s0 }
   0x4   :  { %p1281_p2 = pnand %p1279_p1, %p1276_p0 }
   0x6   :  { %1284 = shalt.err (!%p1281_p2)  }
   0x7   :  { %s1445_s25 = smov [#allocation4]  }
   0x8   :  { %11 = dma.hbm_to_smem %s1890_s0, 16, %s1445_s25, [#allocation3] }
   0x9   :  { %1415 = dma.done.wait [#allocation3], 16 }
   0xa   :  { %1416 = vsyncadd [#allocation3], 4294967280 }
   0xb   :  { %13 = sfence }
   0xc   :  { %14 = vsyncpa [#allocation6], 0 }
   0xd   :  { %16 = vsyncpa [#allocation6 + $0x1], 0 }
   0xe   :  { %17 = vsyncpa [#allocation9], 0 }
   0xf   :  { %18 = vsyncpa [#allocation7], 0 }
  0x10   :  { %20 = vsyncpa [#allocation7 + $0x1], 0  ;;  %s1498_s28 = smov 0   ;;  %s1500_s29 = smov 0  }
  0x11   :  { %s1502_s30 = smov 0   ;;  %s1504_s6 = smov 0  }
  0x12 LB: > { %s1519_s0 = sadd.s32 4294967295, %s1443_s6   ;;  %s996_s7 = sadd.s32 4294967294, %s1443_s6   ;;  %s1443_s6 = sphi %s1504_s6, %s1916_s6   ;;  %s1439_s30 = sphi %s1502_s30, %s1915_s30   ;;  %s1435_s29 = sphi %s1500_s29, %s1914_s29   ;;  %s1431_s28 = sphi %s1498_s28, %s1913_s28  }
  0x13   : > { %p46_p3 = scmp.ne.s32.totalorder %s1435_s29, %s1431_s28  ;;  %p1896_p4 = scmp.eq.s32.totalorder %s1519_s0, 0 }
  0x14   : > { %p139_p6 = scmp.eq.s32.totalorder %s996_s7, 1  ;;  %p997_p8 = scmp.ge.s32.totalorder %s1443_s6, 1 }
  0x15   : > { %p1528_p7 = por %p1896_p4, %p46_p3  ;;  %p146_p10 = scmp.lt.s32.totalorder %s1443_s6, 3 }
  0x16   : > { %p1533_p9 = por %p139_p6, %p46_p3  ;;  %s1446_s11 = smov [#allocation8]  }
  0x17   : > { %s1899_s8 = scalar_select %p1528_p7, 1, 0 }
  0x18   : > { %s1900_s9 = scalar_select %p1533_p9, 1, 0 }
  0x19   : > { %p1539_p12 = pnand %p997_p8, %p146_p10  ;;  %s158_s12 = sshll.u32 %s1446_s11, 4  ;;  %s1543_s12 = int_to_ptr.vmem [resolvable:$true] %s158_s12 }
  0x1a   : > { %s1447_s14 = smov [#allocation10]   ;;  %s1285_s18 = scalar_lea.hbm %s1892_s2, 1024 }
  0x1b   : > { %p1153_p13 = pneg %p1539_p12  ;;  %s174_s15 = sshll.u32 %s1447_s14, 4  ;;  %s1554_s15 = int_to_ptr.vmem [resolvable:$true] %s174_s15 }
  0x1c   : > { %p1286_p2 = scmp.ne.s32.totalorder %s1892_s2, %s1285_s18  ;;  %p1292_p10 = scmp.lt.u32.totalorder %s1285_s18, %s1892_s2 }
  0x1d   : > { %p1550_p1 = pnand %p1153_p13, %p1896_p4 }
  0x1f   : > { %p1287_p3 = pneg %p1550_p1 }
  0x21   : > { %p1288_p6 = pnand %p1287_p3, %p1286_p2 }
  0x23   : > { %p1289_p8 = pneg %p1288_p6 }
  0x25   : > { %p1294_p13 = pnand %p1292_p10, %p1289_p8 }
  0x27   : > { %1297 = shalt.err (!%p1294_p13)
}
  0x28   : > { %s1298_s23 = scalar_lea.vmem %s1543_s12, 1024  ;;  %p1306_p5 = scmp.lt.s32.totalorder %s1543_s12, %s1543_s12 }
  0x29   : > { %p1299_p0 = scmp.ne.s32.totalorder %s1543_s12, %s1298_s23  ;;  %p1307_p2 = scmp.lt.s32.totalorder %s1298_s23, %s1298_s23 }
  0x2b   : > { %p1301_p11 = pnand %p1299_p0, %p1287_p3  ;;  %p1308_p6 = por %p1307_p2, %p1306_p5 }
  0x2d   : > { %p1302_p4 = pneg %p1301_p11 }
  0x2f   : > { %p1309_p9 = pnand %p1308_p6, %p1302_p4 }
  0x31   : > { %1312 = shalt.err (!%p1309_p9)
}
  0x32   : > { %s1448_s24 = smov 64   ;;  %s1449_s25 = smov 4  }
  0x33   : > { %1156 = dma.hbm_to_vmem [thread:$0]  (!%p1550_p1), %s1892_s2, 1024, %s1543_s12, [#allocation9], %s1448_s24, %s1448_s24, %s1449_s25  }
  0x34   : > { %s1313_s14 = scalar_lea.hbm %s1894_s4, 2048 }
  0x35   : > { %p1314_p4 = scmp.ne.s32.totalorder %s1894_s4, %s1313_s14  ;;  %p1320_p11 = scmp.lt.u32.totalorder %s1313_s14, %s1894_s4 }
  0x37   : > { %p1316_p5 = pnand %p1314_p4, %p1287_p3 }
  0x39   : > { %p1317_p9 = pneg %p1316_p5 }
  0x3b   : > { %p1322_p0 = pnand %p1320_p11, %p1317_p9 }
  0x3d   : > { %1325 = shalt.err (!%p1322_p0)
}
  0x3e   : > { %s1326_s12 = scalar_lea.vmem %s1554_s15, 2048  ;;  %p1334_p2 = scmp.lt.s32.totalorder %s1554_s15, %s1554_s15 }
  0x3f   : > { %p1327_p8 = scmp.ne.s32.totalorder %s1554_s15, %s1326_s12  ;;  %p1335_p6 = scmp.lt.s32.totalorder %s1326_s12, %s1326_s12 }
  0x41   : > { %p1329_p10 = pnand %p1327_p8, %p1287_p3  ;;  %p1336_p4 = por %p1335_p6, %p1334_p2 }
  0x43   : > { %p1330_p13 = pneg %p1329_p10 }
  0x45   : > { %p1337_p5 = pnand %p1336_p4, %p1330_p13 }
  0x47   : > { %1340 = shalt.err (!%p1337_p5)
}
  0x48   : > { %s1450_s20 = smov 128   ;;  %s1451_s21 = smov 8  }
  0x49   : > { %1159 = dma.hbm_to_vmem [thread:$0]  (!%p1550_p1), %s1894_s4, 2048, %s1554_s15, [#allocation9], %s1450_s20, %s1450_s20, %s1451_s21  }
  0x4a   : > { %s1612_s26 = sadd.s32 1, %s1443_s6   ;;  %s33_s7 = sadd.s32 1, %s1439_s30 }
  0x4b   : > { %s30_s27 = ssub.s32 %s1443_s6, %s1612_s26  ;;  %p40_p9 = scmp.ne.s32.totalorder %s1439_s30, %s1435_s29 }
  0x4c   : > { %p31_p3 = scmp.eq.s32.totalorder %s30_s27, 0  ;;  %p41_p11 = scmp.eq.s32.totalorder %s1443_s6, 0 }
  0x4d   : > { %p1903_p8 = scmp.eq.s32.totalorder %s1519_s0, 1  ;;  %p1170_p13 = scmp.lt.s32.totalorder %s1443_s6, 2 }
  0x4e   : > { %s1621_s11 = scalar_select %p31_p3, %s1439_s30, %s33_s7  }
  0x4f   : > { %p42_p0 = por %p41_p11, %p40_p9  ;;  %p1625_p10 = por %p1903_p8, %p40_p9 }
  0x50   : > { %s188_s13 = sand.u32 1, %s1439_s30   ;;  %s1039_s15 = sshll.u32 %s1443_s6, 11 }
  0x51   : > { %s1904_s14 = scalar_select %p1625_p10, 1, 0 }
  0x52   : > { %s1001_s16 = sshll.u32 %s188_s13, 7  ;;  %s1635_s19 = scalar_lea.hbm %s1891_s1, %s1039_s15 }
  0x53   : > { %s192_s12 = scalar_lea.vmem [#allocation5], %s1001_s16  ;;  %p1639_p1 = pnand %p1170_p13, %p42_p0 }
  0x54   : > { %s199_s20 = sshll.u32 %s192_s12, 4  ;;  %s1643_s22 = scalar_lea.sflag [#allocation6], %s188_s13  ;;  %s1637_s20 = int_to_ptr.vmem [resolvable:$true] %s199_s20 }
  0x55   : > { %s1341_s23 = scalar_lea.hbm %s1635_s19, 2048  ;;  %p1343_p6 = pneg %p1639_p1 }
  0x56   : > { %p1342_p2 = scmp.ne.s32.totalorder %s1635_s19, %s1341_s23  ;;  %s1346_s16 = scalar_lea.hbm %s1891_s1, 4096 }
  0x57   : > { %p1347_p3 = scmp.lt.u32.totalorder %s1635_s19, %s1891_s1  ;;  %p1348_p9 = scmp.lt.u32.totalorder %s1346_s16, %s1341_s23 }
  0x58   : > { %p1344_p4 = pnand %p1343_p6, %p1342_p2  ;;  %p1350_p0 = scmp.lt.u32.totalorder %s1341_s23, %s1635_s19 }
  0x59   : > { %p1349_p11 = por %p1348_p9, %p1347_p3 }
  0x5a   : > { %p1345_p5 = pneg %p1344_p4 }
  0x5b   : > { %p1351_p8 = por %p1350_p0, %p1349_p11 }
  0x5d   : > { %p1352_p13 = pnand %p1351_p8, %p1345_p5 }
  0x5f   : > { %1355 = shalt.err (!%p1352_p13)
}
  0x60   : > { %s1356_s13 = scalar_lea.vmem %s1637_s20, 2048  ;;  %s1452_s18 = smov [#allocation5]  }
  0x61   : > { %p1357_p2 = scmp.ne.s32.totalorder %s1637_s20, %s1356_s13  ;;  %s1361_s12 = sshll.u32 %s1452_s18, 4  ;;  %s1362_s12 = int_to_ptr.vmem [resolvable:$false] %s1361_s12 }
  0x62   : > { %s1363_s27 = scalar_lea.vmem %s1362_s12, 4096  ;;  %p1364_p7 = scmp.lt.s32.totalorder %s1637_s20, %s1362_s12 }
  0x63   : > { %p1359_p4 = pnand %p1357_p2, %p1343_p6  ;;  %p1365_p3 = scmp.lt.s32.totalorder %s1363_s27, %s1356_s13 }
  0x65   : > { %p1360_p10 = pneg %p1359_p4  ;;  %p1366_p9 = por %p1365_p3, %p1364_p7 }
  0x67   : > { %p1367_p11 = pnand %p1366_p9, %p1360_p10 }
  0x69   : > { %1370 = shalt.err (!%p1367_p11)
}
  0x6a   : > { %1163 = dma.hbm_to_vmem [thread:$0]  (!%p1639_p1), %s1635_s19, 2048, %s1637_s20, %s1643_s22, %s1448_s24, %s1448_s24, %s1449_s25  }
  0x6b   : > { %211 = sbr.rel (%p1539_p12) target bundleno = 1060 (0x424), region = 36  ;;  %s1677_s23 = sand.u32 (!%p1539_p12), 1, %s1435_s29  }
  0x6c   : > { %s1005_s7 = sshll.u32 (!%p1539_p12), %s1677_s23, 7  ;;  %s214_s16 = scalar_lea.sflag (!%p1539_p12), [#allocation6], %s1677_s23 }
  0x6d   : > { %s1681_s15 = scalar_lea.vmem (!%p1539_p12), [#allocation5], %s1005_s7  ;;  %p1906_p7 = scmp.ne.s32.totalorder (!%p1539_p12), %s1899_s8, 0 }
  0x72   : > { %1418 = dma.done.wait (%p1906_p7), %s214_s16, 2048  }
  0x73   : > { %1420 = vsyncadd (%p1906_p7), %s214_s16, 4294965248  ;;  %p1907_p10 = scmp.eq.s32.totalorder %s1519_s0, 0 }
  0x75   : > { %1422 = dma.done.wait (%p1907_p10), [#allocation9], 3072   ;;  %p1908_p12 = pmov %p1907_p10 }
  0x76   : > { %s248_s10 = scalar_lea.vmem [#allocation11], %s1677_s23  ;;  %p1909_p1 = scmp.ne.s32.totalorder %s1519_s0, 0 }
  0x77   : > { %1424 = vsyncadd (%p1908_p12), [#allocation9], 4294964224  ;;  %v1694_v0 = vld [vmem:[#allocation10 + $0x10] sm:$0xff] (!%p1909_p1)  ;;  %v1696_v1 = vld [vmem:[#allocation10] sm:$0xff] (!%p1909_p1) }
  0x78   : > { %253 = sbr.rel (%p1909_p1) target bundleno = 311 (0x137), region = 52  ;;  %v1698_v2 = vld [vmem:[#allocation10 + $0x18] sm:$0xff] (!%p1909_p1)  ;;  %v272_v3 = vmul.f32 (!%p1909_p1), %v1694_v0, %v1694_v0  ;;  %v270_v4 = vmul.f32 (!%p1909_p1), %v1696_v1, %v1696_v1  ;;  %v1704_v5 = vld [vmem:[#allocation10 + $0x8] sm:$0xff] (!%p1909_p1)  ;;  %v1712_v9 = vld [vmem:[#allocation10 + $0x20] sm:$0xff] (!%p1909_p1) }
  0x79   : > { %v273_v6 = vmul.f32 (!%p1909_p1), %v1698_v2, %v1698_v2  ;;  %v271_v7 = vmul.f32 (!%p1909_p1), %v1704_v5, %v1704_v5  ;;  %v1710_v8 = vld [vmem:[#allocation10 + $0x28] sm:$0xff] (!%p1909_p1)  ;;  %v274_v11 = vmul.f32 (!%p1909_p1), %v1712_v9, %v1712_v9  ;;  %v1718_v12 = vld [vmem:[#allocation10 + $0x38] sm:$0xff] (!%p1909_p1)  ;;  %v1720_v13 = vld [vmem:[#allocation10 + $0x30] sm:$0xff] (!%p1909_p1) }
  0x7a   : > { %290 = vadd.xlane.f32.xlu1 (!%p1909_p1), %v272_v3  ;;  %286 = vadd.xlane.f32.xlu0 (!%p1909_p1), %v270_v4  ;;  %v275_v10 = vmul.f32 (!%p1909_p1), %v1710_v8, %v1710_v8  ;;  %v277_v14 = vmul.f32 (!%p1909_p1), %v1718_v12, %v1718_v12  ;;  %v276_v15 = vmul.f32 (!%p1909_p1), %v1720_v13, %v1720_v13  ;;  %v1726_v16 = vld [vmem:[#allocation10 + $0x48] sm:$0xff] (!%p1909_p1)  ;;  %v1728_v17 = vld [vmem:[#allocation10 + $0x40] sm:$0xff] (!%p1909_p1)  ;;  %v1734_v20 = vld [vmem:[#allocation10 + $0x58] sm:$0xff] (!%p1909_p1) }
  0x7b   : > { %v279_v18 = vmul.f32 (!%p1909_p1), %v1726_v16, %v1726_v16  ;;  %v278_v19 = vmul.f32 (!%p1909_p1), %v1728_v17, %v1728_v17  ;;  %v1736_v21 = vld [vmem:[#allocation10 + $0x50] sm:$0xff] (!%p1909_p1)  ;;  %v281_v22 = vmul.f32 (!%p1909_p1), %v1734_v20, %v1734_v20  ;;  %v1742_v24 = vld [vmem:[#allocation10 + $0x68] sm:$0xff] (!%p1909_p1)  ;;  %v1744_v25 = vld [vmem:[#allocation10 + $0x60] sm:$0xff] (!%p1909_p1) }
  0x7c   : > { %v280_v23 = vmul.f32 (!%p1909_p1), %v1736_v21, %v1736_v21  ;;  %v283_v26 = vmul.f32 (!%p1909_p1), %v1742_v24, %v1742_v24  ;;  %v282_v27 = vmul.f32 (!%p1909_p1), %v1744_v25, %v1744_v25  ;;  %v1750_v28 = vld [vmem:[#allocation10 + $0x78] sm:$0xff] (!%p1909_p1)  ;;  %v1752_v29 = vld [vmem:[#allocation10 + $0x70] sm:$0xff] (!%p1909_p1) }
  0x7d   : > { %v285_v30 = vmul.f32 (!%p1909_p1), %v1750_v28, %v1750_v28  ;;  %v284_v31 = vmul.f32 (!%p1909_p1), %v1752_v29, %v1752_v29 }
  0x7e   : > { %292 = vadd.xlane.f32.xlu1 (!%p1909_p1), %v273_v6  ;;  %288 = vadd.xlane.f32.xlu0 (!%p1909_p1), %v271_v7 }
  0x82   : > { %296 = vadd.xlane.f32.xlu1 %v275_v10  ;;  %294 = vadd.xlane.f32.xlu0 %v274_v11 }
  0x86   : > { %300 = vadd.xlane.f32.xlu1 %v277_v14  ;;  %298 = vadd.xlane.f32.xlu0 %v276_v15 }
  0x8a   : > { %304 = vadd.xlane.f32.xlu1 %v279_v18  ;;  %302 = vadd.xlane.f32.xlu0 %v278_v19 }
  0x8e   : > { %308 = vadd.xlane.f32.xlu1 %v281_v22  ;;  %306 = vadd.xlane.f32.xlu0 %v280_v23 }
  0x92   : > { %312 = vadd.xlane.f32.xlu1 %v283_v26  ;;  %310 = vadd.xlane.f32.xlu0 %v282_v27 }
  0x96   : > { %316 = vadd.xlane.f32.xlu1 %v285_v30  ;;  %314 = vadd.xlane.f32.xlu0 %v284_v31 }
 0x107   : > { %v291_v32 = vpop.xlane.xlu1 %290  ;;  %v287_v33 = vpop.xlane.xlu0 %286 }
 0x108   : > { %v320_v34 = vmax.f32 %v291_v32, 1e-24  ;;  %v318_v35 = vmax.f32 %v287_v33, 1e-24 }
 0x10a   : > { %1215 = vrsqrt.f32 %v320_v34 }
 0x10b   : > { %v293_v36 = vpop.xlane.xlu1 %292  ;;  %v289_v37 = vpop.xlane.xlu0 %288  ;;  %1217 = vrsqrt.f32 %v318_v35 }
 0x10c   : > { %v321_v38 = vmax.f32 %v293_v36, 1e-24  ;;  %v319_v39 = vmax.f32 %v289_v37, 1e-24 }
 0x10e   : > { %1219 = vrsqrt.f32 %v321_v38 }
 0x10f   : > { %1221 = vrsqrt.f32 %v319_v39  ;;  %v297_v40 = vpop.xlane.xlu1 %296  ;;  %v295_v41 = vpop.xlane.xlu0 %294 }
 0x110   : > { %v323_v42 = vmax.f32 %v297_v40, 1e-24  ;;  %v322_v43 = vmax.f32 %v295_v41, 1e-24 }
 0x112   : > { %1223 = vrsqrt.f32 %v323_v42 }
 0x113   : > { %1225 = vrsqrt.f32 %v322_v43  ;;  %v301_v44 = vpop.xlane.xlu1 %300  ;;  %v299_v45 = vpop.xlane.xlu0 %298 }
 0x114   : > { %v325_v46 = vmax.f32 %v301_v44, 1e-24  ;;  %v324_v47 = vmax.f32 %v299_v45, 1e-24  ;;  %v1216_v48 = vpop.eup %1215 }
 0x115   : > { %v1218_v49 = vpop.eup %1217  ;;  %v352_v56 = vmul.f32 %v1216_v48, %v1694_v0 }
 0x116   : > { %1227 = vrsqrt.f32 %v325_v46  ;;  %v350_v58 = vmul.f32 %v1218_v49, %v1696_v1 }
 0x117   : > { %1229 = vrsqrt.f32 %v324_v47  ;;  %v305_v50 = vpop.xlane.xlu1 %304  ;;  %v303_v51 = vpop.xlane.xlu0 %302 }
 0x118   : > { %v1220_v52 = vpop.eup %1219  ;;  %v327_v53 = vmax.f32 %v305_v50, 1e-24  ;;  %v326_v54 = vmax.f32 %v303_v51, 1e-24 }
 0x119   : > { %v1222_v55 = vpop.eup %1221  ;;  %v353_v57 = vmul.f32 %v1220_v52, %v1698_v2 }
 0x11a   : > { %v351_v59 = vmul.f32 %v1222_v55, %v1704_v5  ;;  %1231 = vrsqrt.f32 %v327_v53 }
 0x11b   : > { %v367_v60 = vpack.c.bf16 %v353_v57, %v352_v56  ;;  %1233 = vrsqrt.f32 %v326_v54  ;;  %v309_v61 = vpop.xlane.xlu1 %308  ;;  %v307_v62 = vpop.xlane.xlu0 %306 }
 0x11c   : > { %v1224_v63 = vpop.eup %1223  ;;  %v366_v3 = vpack.c.bf16 %v351_v59, %v350_v58  ;;  %v329_v4 = vmax.f32 %v309_v61, 1e-24  ;;  %v328_v6 = vmax.f32 %v307_v62, 1e-24 }
 0x11d   : > { %v1226_v7 = vpop.eup %1225  ;;  %375 = vst [vmem:[#allocation2 + $0x8] sm:$0xff] %v367_v60  ;;  %v355_v10 = vmul.f32 %v1224_v63, %v1710_v8 }
 0x11e   : > { %374 = vst [vmem:[#allocation2] sm:$0xff] %v366_v3  ;;  %v354_v0 = vmul.f32 %v1226_v7, %v1712_v9  ;;  %1235 = vrsqrt.f32 %v329_v4 }
 0x11f   : > { %1237 = vrsqrt.f32 %v328_v6  ;;  %v313_v1 = vpop.xlane.xlu1 %312  ;;  %v311_v2 = vpop.xlane.xlu0 %310 }
 0x120   : > { %v1228_v5 = vpop.eup %1227  ;;  %v368_v11 = vpack.c.bf16 %v355_v10, %v354_v0  ;;  %v331_v14 = vmax.f32 %v313_v1, 1e-24  ;;  %v330_v15 = vmax.f32 %v311_v2, 1e-24 }
 0x121   : > { %v1230_v18 = vpop.eup %1229  ;;  %v357_v19 = vmul.f32 %v1228_v5, %v1718_v12 }
 0x122   : > { %376 = vst [vmem:[#allocation2 + $0x10] sm:$0xff] %v368_v11  ;;  %v356_v22 = vmul.f32 %v1230_v18, %v1720_v13  ;;  %1239 = vrsqrt.f32 %v331_v14 }
 0x123   : > { %1241 = vrsqrt.f32 %v330_v15  ;;  %v317_v8 = vpop.xlane.xlu1 %316  ;;  %v315_v23 = vpop.xlane.xlu0 %314 }
 0x124   : > { %v1232_v26 = vpop.eup %1231  ;;  %v369_v9 = vpack.c.bf16 %v357_v19, %v356_v22  ;;  %v333_v27 = vmax.f32 %v317_v8, 1e-24  ;;  %v332_v30 = vmax.f32 %v315_v23, 1e-24 }
 0x125   : > { %v1234_v31 = vpop.eup %1233  ;;  %v359_v32 = vmul.f32 %v1232_v26, %v1726_v16 }
 0x126   : > { %377 = vst [vmem:[#allocation2 + $0x18] sm:$0xff] %v369_v9  ;;  %v358_v33 = vmul.f32 %v1234_v31, %v1728_v17  ;;  %1243 = vrsqrt.f32 %v333_v27 }
 0x127   : > { %1245 = vrsqrt.f32 %v332_v30 }
 0x128   : > { %v1236_v12 = vpop.eup %1235  ;;  %v370_v34 = vpack.c.bf16 %v359_v32, %v358_v33 }
 0x129   : > { %v1238_v35 = vpop.eup %1237  ;;  %v361_v13 = vmul.f32 %v1236_v12, %v1734_v20 }
 0x12a   : > { %378 = vst [vmem:[#allocation2 + $0x20] sm:$0xff] %v370_v34  ;;  %v360_v36 = vmul.f32 %v1238_v35, %v1736_v21 }
 0x12c   : > { %v1240_v37 = vpop.eup %1239  ;;  %v371_v38 = vpack.c.bf16 %v361_v13, %v360_v36 }
 0x12d   : > { %v1242_v39 = vpop.eup %1241  ;;  %v363_v40 = vmul.f32 %v1240_v37, %v1742_v24 }
 0x12e   : > { %379 = vst [vmem:[#allocation2 + $0x28] sm:$0xff] %v371_v38  ;;  %v362_v16 = vmul.f32 %v1242_v39, %v1744_v25 }
 0x130   : > { %v1244_v41 = vpop.eup %1243  ;;  %v372_v17 = vpack.c.bf16 %v363_v40, %v362_v16 }
 0x131   : > { %v1246_v42 = vpop.eup %1245  ;;  %v365_v43 = vmul.f32 %v1244_v41, %v1750_v28 }
 0x132   : > { %380 = vst [vmem:[#allocation2 + $0x30] sm:$0xff] %v372_v17  ;;  %v364_v44 = vmul.f32 %v1246_v42, %v1752_v29 }
 0x134   : > { %v373_v20 = vpack.c.bf16 %v365_v43, %v364_v44 }
 0x136   : > { %381 = vst [vmem:[#allocation2 + $0x38] sm:$0xff] %v373_v20 }
 0x137 PF: > { %v1247_v21 = vld [vmem:[#allocation8] sm:$0xff]   ;;  %v1248_v45 = vld [vmem:[#allocation8 + $0x8] sm:$0xff]   ;;  %v1249_v24 = vld [vmem:[#allocation8 + $0x10] sm:$0xff]   ;;  %v1453_v4 = vmov 0.0   ;;  %vm1454_vm0 = vmmov 0   ;;  %s885_s25 = sld [smem:[#allocation4 + %s1519_s0]] }
 0x138   : > { %1073 = vmatprep.subr.bf16.mxu0 %v1247_v21  ;;  %v1250_v25 = vld [vmem:[#allocation8 + $0x18] sm:$0xff]   ;;  %v1255_v46 = vld [vmem:[%s1681_s15] sm:$0xff]   ;;  %v1252_v29 = vld [vmem:[#allocation8 + $0x28] sm:$0xff]   ;;  %1121 = vmatprep.subr.bf16.mxu1 %v1453_v4  ;;  %s1036_s19 = sshll.u32 %s1519_s0, 4  ;;  %s911_s20 = sshll.u32 %s248_s10, 4  ;;  %s1846_s20 = int_to_ptr.vmem [resolvable:$true] %s911_s20 }
 0x139   : > { %1074 = vmatpush3.bf16.msra.mxu0 %v1247_v21  ;;  %1089 = vmatprep.mubr.bf16.mxu0 %v1255_v46  ;;  %v1251_v28 = vld [vmem:[#allocation8 + $0x20] sm:$0xff]   ;;  %v1253_v47 = vld [vmem:[#allocation8 + $0x30] sm:$0xff]   ;;  %v1254_v48 = vld [vmem:[#allocation8 + $0x38] sm:$0xff]   ;;  %s1844_s17 = scalar_lea.hbm %s1895_s5, %s1036_s19  ;;  %s899_s13 = scalar_lea.sflag [#allocation7], %s1677_s23 }
 0x13a   : > { %1075 = vmatprep.subr.bf16.mxu0 %v1248_v45  ;;  %v1256_v49 = vld [vmem:[%s1681_s15 + $0x8] sm:$0xff]   ;;  %v1257_v50 = vld [vmem:[%s1681_s15 + $0x10] sm:$0xff]   ;;  %v1258_v51 = vld [vmem:[%s1681_s15 + $0x18] sm:$0xff]   ;;  %1137 = vmatprep.mubr.msk.bf16.mxu1 %vm1454_vm0, %v1453_v4  ;;  %s1371_s18 = scalar_lea.vmem %s1846_s20, 16  ;;  %p1910_p5 = scmp.ne.s32.totalorder %s1904_s14, 0 }
 0x13b   : > { %v1259_v52 = vld [vmem:[%s1681_s15 + $0x20] sm:$0xff]   ;;  %v1260_v53 = vld [vmem:[%s1681_s15 + $0x28] sm:$0xff]   ;;  %v1261_v54 = vld [vmem:[%s1681_s15 + $0x30] sm:$0xff]   ;;  %p1372_p6 = scmp.ne.s32.totalorder %s1846_s20, %s1371_s18  ;;  %s1455_s0 = smov [#allocation11]  }
 0x13c   : > { %v1262_v55 = vld [vmem:[%s1681_s15 + $0x38] sm:$0xff]   ;;  %v1263_v56 = vld [vmem:[%s1681_s15 + $0x40] sm:$0xff]   ;;  %v1264_v57 = vld [vmem:[%s1681_s15 + $0x48] sm:$0xff]   ;;  %s1375_s12 = sshll.u32 %s1455_s0, 4  ;;  %s1376_s12 = int_to_ptr.vmem [resolvable:$false] %s1375_s12 }
 0x13d   : > { %1076 = vmatpush3.bf16.msra.mxu0 %v1248_v45  ;;  %v1265_v58 = vld [vmem:[%s1681_s15 + $0x50] sm:$0xff]   ;;  %v1266_v59 = vld [vmem:[%s1681_s15 + $0x58] sm:$0xff]   ;;  %v1267_v60 = vld [vmem:[%s1681_s15 + $0x60] sm:$0xff]   ;;  %p1373_p0 = pnand %p1372_p6, %p1910_p5  ;;  %s1377_s27 = scalar_lea.vmem %s1376_s12, 32 }
 0x13e   : > { %1077 = vmatprep.subr.bf16.mxu0 %v1249_v24  ;;  %v1268_v61 = vld [vmem:[%s1681_s15 + $0x68] sm:$0xff]   ;;  %v1269_v62 = vld [vmem:[%s1681_s15 + $0x70] sm:$0xff]   ;;  %v1270_v63 = vld [vmem:[%s1681_s15 + $0x78] sm:$0xff]   ;;  %p1378_p13 = scmp.lt.s32.totalorder %s1846_s20, %s1376_s12  ;;  %p1379_p2 = scmp.lt.s32.totalorder %s1377_s27, %s1371_s18 }
 0x13f   : > { %v820_v3 = vld [vmem:[#allocation2] sm:$0xff]  ;;  %v821_v6 = vld [vmem:[#allocation2 + $0x8] sm:$0xff]  ;;  %v822_v7 = vld [vmem:[#allocation2 + $0x10] sm:$0xff]  ;;  %p1374_p8 = pneg %p1373_p0 }
 0x140   : > { %1122 = vmatpush3.bf16.xpose.msra.mxu1 %v820_v3  ;;  %v823_v10 = vld [vmem:[#allocation2 + $0x18] sm:$0xff]  ;;  %v824_v0 = vld [vmem:[#allocation2 + $0x20] sm:$0xff]  ;;  %v825_v1 = vld [vmem:[#allocation2 + $0x28] sm:$0xff]  ;;  %p1380_p4 = por %p1379_p2, %p1378_p13 }
 0x141   : > { %1078 = vmatpush3.bf16.msra.mxu0 %v1249_v24  ;;  %1123 = vmatprep.subr.bf16.mxu1 %v1453_v4  ;;  %v1799_v2 = vld [vmem:[%s1893_s3] ss:$0 sm:$0xff] }
 0x142   : > { %1079 = vmatprep.subr.bf16.mxu0 %v1250_v25  ;;  %p1381_p3 = pnand %p1380_p4, %p1374_p8 }
 0x145   : > { %1080 = vmatpush3.bf16.msra.mxu0 %v1250_v25 }
 0x146   : > { %1081 = vmatprep.subr.bf16.mxu0 %v1251_v28 }
 0x148   : > { %1124 = vmatpush3.bf16.xpose.msra.mxu1 %v821_v6 }
 0x149   : > { %1082 = vmatpush3.bf16.msra.mxu0 %v1251_v28  ;;  %1125 = vmatprep.subr.bf16.mxu1 %v1453_v4 }
 0x14a   : > { %1083 = vmatprep.subr.bf16.mxu0 %v1252_v29 }
 0x14d   : > { %1084 = vmatpush3.bf16.msra.mxu0 %v1252_v29 }
 0x14e   : > { %1085 = vmatprep.subr.bf16.mxu0 %v1253_v47 }
 0x150   : > { %1126 = vmatpush3.bf16.xpose.msra.mxu1 %v822_v7 }
 0x151   : > { %1086 = vmatpush3.bf16.msra.mxu0 %v1253_v47  ;;  %1127 = vmatprep.subr.bf16.mxu1 %v1453_v4 }
 0x152   : > { %1087 = vmatprep.subr.bf16.mxu0 %v1254_v48 }
 0x155   : > { %1088 = vmatpush3.bf16.msra.mxu0 %v1254_v48 }
 0x158   : > { %1090 = vmatmul.mubr.bf16.vlgmr.msra.gmra.mrb[0].mxu0 %v1256_v49  ;;  %1128 = vmatpush3.bf16.xpose.msra.mxu1 %v823_v10 }
 0x159   : > { %1093 = vmatprep.mubr.bf16.mxu0 %v1257_v50  ;;  %1129 = vmatprep.subr.bf16.mxu1 %v1453_v4 }
 0x160   : > { %1094 = vmatmul.mubr.bf16.gmra.mrb[4].mxu0 %v1258_v51  ;;  %1130 = vmatpush3.bf16.xpose.msra.mxu1 %v824_v0 }
 0x161   : > { %1097 = vmatprep.mubr.bf16.mxu0 %v1259_v52  ;;  %1131 = vmatprep.subr.bf16.mxu1 %v1453_v4 }
 0x168   : > { %1098 = vmatmul.mubr.bf16.gmra.mrb[8].mxu0 %v1260_v53  ;;  %1132 = vmatpush3.bf16.xpose.msra.mxu1 %v825_v1 }
 0x169   : > { %1101 = vmatprep.mubr.bf16.mxu0 %v1261_v54  ;;  %1133 = vmatprep.subr.bf16.mxu1 %v1453_v4 }
 0x170   : > { %1102 = vmatmul.mubr.bf16.gmra.mrb[12].mxu0 %v1262_v55 }
 0x171   : > { %1105 = vmatprep.mubr.bf16.mxu0 %v1263_v56 }
 0x178   : > { %1106 = vmatmul.mubr.bf16.gmra.mrb[16].mxu0 %v1264_v57 }
 0x179   : > { %1109 = vmatprep.mubr.bf16.mxu0 %v1265_v58 }
 0x180   : > { %1110 = vmatmul.mubr.bf16.gmra.mrb[20].mxu0 %v1266_v59 }
 0x181   : > { %1113 = vmatprep.mubr.bf16.mxu0 %v1267_v60 }
 0x188   : > { %1114 = vmatmul.mubr.bf16.gmra.mrb[24].mxu0 %v1268_v61 }
 0x189   : > { %1117 = vmatprep.mubr.bf16.mxu0 %v1269_v62 }
 0x190   : > { %1118 = vmatmul.mubr.bf16.gmra.mrb[28].mxu0 %v1270_v63 }
 0x22b   : > { %v1091_v5 = vpop.f32.mrb[0].mxu0 }
 0x22c   : > { %v615_v11 = vpop.f32.mrb[1].mxu0  ;;  %v624_v19 = vadd.f32 %v1091_v5, %v1799_v2 }
 0x22d   : > { %v616_v14 = vadd.f32 %v1799_v2, %v615_v11  ;;  %v1092_v15 = vpop.f32.mrb[2].mxu0 }
 0x22e   : > { %v618_v18 = vpop.f32.mrb[3].mxu0  ;;  %v627_v23 = vadd.f32 %v1092_v15, %v1799_v2  ;;  %v744_v9 = vmax.f32 %v624_v19, 0.0 }
 0x22f   : > { %v619_v22 = vadd.f32 %v1799_v2, %v618_v18  ;;  %v742_v8 = vmax.f32 %v616_v14, 0.0 }
 0x230   : > { %v745_v32 = vmax.f32 %v627_v23, 0.0 }
 0x231   : > { %v743_v26 = vmax.f32 %v619_v22, 0.0 }
 0x233   : > { %v774_v27 = vadd.f32 %v743_v26, %v742_v8  ;;  %v1095_v30 = vpop.f32.mrb[4].mxu0 }
 0x234   : > { %v631_v31 = vpop.f32.mrb[5].mxu0  ;;  %v640_v13 = vadd.f32 %v1095_v30, %v1799_v2 }
 0x235   : > { %v775_v33 = vadd.f32 %v774_v27, %v744_v9  ;;  %v632_v12 = vadd.f32 %v1799_v2, %v631_v31  ;;  %v1096_v34 = vpop.f32.mrb[6].mxu0 }
 0x236   : > { %v634_v35 = vpop.f32.mrb[7].mxu0  ;;  %v643_v40 = vadd.f32 %v1096_v34, %v1799_v2  ;;  %v748_v41 = vmax.f32 %v640_v13, 0.0 }
 0x237   : > { %v746_v36 = vmax.f32 %v632_v12, 0.0  ;;  %v776_v37 = vadd.f32 %v775_v33, %v745_v32  ;;  %v635_v38 = vadd.f32 %v1799_v2, %v634_v35 }
 0x238   : > { %v749_v44 = vmax.f32 %v643_v40, 0.0 }
 0x239   : > { %v777_v39 = vadd.f32 %v776_v37, %v746_v36  ;;  %v747_v16 = vmax.f32 %v635_v38, 0.0 }
 0x23b   : > { %v778_v17 = vadd.f32 %v777_v39, %v747_v16  ;;  %v1099_v42 = vpop.f32.mrb[8].mxu0 }
 0x23c   : > { %v647_v43 = vpop.f32.mrb[9].mxu0  ;;  %v656_v25 = vadd.f32 %v1099_v42, %v1799_v2 }
 0x23d   : > { %v779_v20 = vadd.f32 %v778_v17, %v748_v41  ;;  %v648_v21 = vadd.f32 %v1799_v2, %v647_v43  ;;  %v1100_v45 = vpop.f32.mrb[10].mxu0 }
 0x23e   : > { %v650_v24 = vpop.f32.mrb[11].mxu0  ;;  %v659_v48 = vadd.f32 %v1100_v45, %v1799_v2  ;;  %v752_v50 = vmax.f32 %v656_v25, 0.0 }
 0x23f   : > { %v750_v46 = vmax.f32 %v648_v21, 0.0  ;;  %v780_v28 = vadd.f32 %v779_v20, %v749_v44  ;;  %v651_v29 = vadd.f32 %v1799_v2, %v650_v24 }
 0x240   : > { %v753_v54 = vmax.f32 %v659_v48, 0.0 }
 0x241   : > { %v781_v47 = vadd.f32 %v780_v28, %v750_v46  ;;  %v751_v49 = vmax.f32 %v651_v29, 0.0 }
 0x243   : > { %v782_v51 = vadd.f32 %v781_v47, %v751_v49  ;;  %v1103_v52 = vpop.f32.mrb[12].mxu0 }
 0x244   : > { %v663_v53 = vpop.f32.mrb[13].mxu0  ;;  %v672_v59 = vadd.f32 %v1103_v52, %v1799_v2 }
 0x245   : > { %v783_v55 = vadd.f32 %v782_v51, %v752_v50  ;;  %v664_v56 = vadd.f32 %v1799_v2, %v663_v53  ;;  %v1104_v57 = vpop.f32.mrb[14].mxu0 }
 0x246   : > { %v666_v58 = vpop.f32.mrb[15].mxu0  ;;  %v675_v3 = vadd.f32 %v1104_v57, %v1799_v2  ;;  %v756_v7 = vmax.f32 %v672_v59, 0.0 }
 0x247   : > { %v754_v60 = vmax.f32 %v664_v56, 0.0  ;;  %v784_v61 = vadd.f32 %v783_v55, %v753_v54  ;;  %v667_v62 = vadd.f32 %v1799_v2, %v666_v58 }
 0x248   : > { %v757_v5 = vmax.f32 %v675_v3, 0.0 }
 0x249   : > { %v785_v63 = vadd.f32 %v784_v61, %v754_v60  ;;  %v755_v6 = vmax.f32 %v667_v62, 0.0 }
 0x24b   : > { %v786_v10 = vadd.f32 %v785_v63, %v755_v6  ;;  %v1107_v0 = vpop.f32.mrb[16].mxu0 }
 0x24c   : > { %v679_v1 = vpop.f32.mrb[17].mxu0  ;;  %v688_v19 = vadd.f32 %v1107_v0, %v1799_v2 }
 0x24d   : > { %v787_v11 = vadd.f32 %v786_v10, %v756_v7  ;;  %v680_v14 = vadd.f32 %v1799_v2, %v679_v1  ;;  %v1108_v15 = vpop.f32.mrb[18].mxu0 }
 0x24e   : > { %v682_v18 = vpop.f32.mrb[19].mxu0  ;;  %v691_v9 = vadd.f32 %v1108_v15, %v1799_v2  ;;  %v760_v30 = vmax.f32 %v688_v19, 0.0 }
 0x24f   : > { %v758_v22 = vmax.f32 %v680_v14, 0.0  ;;  %v788_v8 = vadd.f32 %v787_v11, %v757_v5  ;;  %v683_v23 = vadd.f32 %v1799_v2, %v682_v18 }
 0x250   : > { %v761_v12 = vmax.f32 %v691_v9, 0.0 }
 0x251   : > { %v789_v26 = vadd.f32 %v788_v8, %v758_v22  ;;  %v759_v27 = vmax.f32 %v683_v23, 0.0 }
 0x253   : > { %v790_v31 = vadd.f32 %v789_v26, %v759_v27  ;;  %v1111_v32 = vpop.f32.mrb[20].mxu0  ;;  %v826_v27 = vld [vmem:[#allocation2 + $0x30] sm:$0xff] }
 0x254   : > { %v695_v33 = vpop.f32.mrb[21].mxu0  ;;  %v704_v37 = vadd.f32 %v1111_v32, %v1799_v2  ;;  %1134 = vmatpush3.bf16.xpose.msra.mxu1 %v826_v27 }
 0x255   : > { %v791_v34 = vadd.f32 %v790_v31, %v760_v30  ;;  %v696_v35 = vadd.f32 %v1799_v2, %v695_v33  ;;  %v1112_v13 = vpop.f32.mrb[22].mxu0  ;;  %1135 = vmatprep.subr.bf16.mxu1 %v1453_v4 }
 0x256   : > { %v698_v36 = vpop.f32.mrb[23].mxu0  ;;  %v707_v41 = vadd.f32 %v1112_v13, %v1799_v2  ;;  %v764_v42 = vmax.f32 %v704_v37, 0.0 }
 0x257   : > { %v762_v38 = vmax.f32 %v696_v35, 0.0  ;;  %v792_v39 = vadd.f32 %v791_v34, %v761_v12  ;;  %v699_v40 = vadd.f32 %v1799_v2, %v698_v36 }
 0x258   : > { %v765_v21 = vmax.f32 %v707_v41, 0.0 }
 0x259   : > { %v793_v16 = vadd.f32 %v792_v39, %v762_v38  ;;  %v763_v17 = vmax.f32 %v699_v40, 0.0 }
 0x25b   : > { %v794_v43 = vadd.f32 %v793_v16, %v763_v17  ;;  %v1115_v44 = vpop.f32.mrb[24].mxu0  ;;  %v886_v16 = vlaneseq  ;;  %v888_v17 = vstv %s885_s25 }
 0x25c   : > { %v711_v20 = vpop.f32.mrb[25].mxu0  ;;  %v720_v28 = vadd.f32 %v1115_v44, %v1799_v2 }
 0x25d   : > { %v795_v45 = vadd.f32 %v794_v43, %v764_v42  ;;  %v712_v24 = vadd.f32 %v1799_v2, %v711_v20  ;;  %v1116_v25 = vpop.f32.mrb[26].mxu0  ;;  %v887_v41 = vand.u32 127, %v886_v16 }
 0x25e   : > { %v714_v46 = vpop.f32.mrb[27].mxu0  ;;  %v723_v50 = vadd.f32 %v1116_v25, %v1799_v2  ;;  %v768_v52 = vmax.f32 %v720_v28, 0.0 }
 0x25f   : > { %v766_v29 = vmax.f32 %v712_v24, 0.0  ;;  %v796_v47 = vadd.f32 %v795_v45, %v765_v21  ;;  %v715_v48 = vadd.f32 %v1799_v2, %v714_v46  ;;  %vm889_vm1 = vcmp.eq.s32.totalorder %v887_v41, %v888_v17 }
 0x260   : > { %v769_v56 = vmax.f32 %v723_v50, 0.0  ;;  %v1035_v21 = vsel %vm889_vm1, 1.0, %v1453_v4 }
 0x261   : > { %v797_v49 = vadd.f32 %v796_v47, %v766_v29  ;;  %v767_v51 = vmax.f32 %v715_v48, 0.0  ;;  %v893_v46 = vsub.f32 1.0, %v1035_v21 }
 0x263   : > { %v798_v53 = vadd.f32 %v797_v49, %v767_v51  ;;  %v1119_v54 = vpop.f32.mrb[28].mxu0 }
 0x264   : > { %v727_v55 = vpop.f32.mrb[29].mxu0  ;;  %v736_v61 = vadd.f32 %v1119_v54, %v1799_v2 }
 0x265   : > { %v799_v57 = vadd.f32 %v798_v53, %v768_v52  ;;  %v728_v58 = vadd.f32 %v1799_v2, %v727_v55  ;;  %v1120_v59 = vpop.f32.mrb[30].mxu0 }
 0x266   : > { %v730_v60 = vpop.f32.mrb[31].mxu0  ;;  %v739_v7 = vadd.f32 %v1120_v59, %v1799_v2  ;;  %v772_v0 = vmax.f32 %v736_v61, 0.0 }
 0x267   : > { %v770_v62 = vmax.f32 %v728_v58, 0.0  ;;  %v800_v63 = vadd.f32 %v799_v57, %v769_v56  ;;  %v731_v3 = vadd.f32 %v1799_v2, %v730_v60  ;;  %v827_v2 = vld [vmem:[#allocation2 + $0x38] sm:$0xff] }
 0x268   : > { %v773_v5 = vmax.f32 %v739_v7, 0.0  ;;  %1136 = vmatpush3.bf16.xpose.msra.mxu1 %v827_v2 }
 0x269   : > { %v801_v6 = vadd.f32 %v800_v63, %v770_v62  ;;  %v771_v10 = vmax.f32 %v731_v3, 0.0 }
 0x26b   : > { %v802_v1 = vadd.f32 %v801_v6, %v771_v10 }
 0x26d   : > { %v803_v11 = vadd.f32 %v802_v1, %v772_v0 }
 0x26f   : > { %v804_v14 = vadd.f32 %v803_v11, %v773_v5 }
 0x271   : > { %v805_v15 = vrot.slane %v804_v14, 4 }
 0x273   : > { %v806_v18 = vadd.f32 %v805_v15, %v804_v14 }
 0x275   : > { %v807_v19 = vrot.slane %v806_v18, 2 }
 0x277   : > { %v808_v22 = vadd.f32 %v807_v19, %v806_v18 }
 0x279   : > { %v809_v8 = vrot.slane %v808_v22, 1 }
 0x27b   : > { %v810_v23 = vadd.f32 %v809_v8, %v808_v22 }
 0x27d   : > { %v812_v26 = vmul.f32 0.00390625, %v810_v23 }
 0x27f   : > { %v813_v9 = vmul.f32 %v812_v26, %v812_v26 }
 0x281   : > { %814 = vadd.xlane.f32.xlu0 %v813_v9 }
 0x30e   : > { %v815_v30 = vpop.xlane.xlu0 %814 }
 0x30f   : > { %v816_v31 = vmax.f32 %v815_v30, 1e-24 }
 0x311   : > { %1271 = vrsqrt.f32 %v816_v31 }
 0x31b   : > { %v1272_v32 = vpop.eup %1271 }
 0x31c   : > { %v818_v33 = vmul.f32 %v1272_v32, %v812_v26 }
 0x31e   : > { %v819_v12 = vpack.c.bf16 %v818_v33, %v818_v33 }
 0x320   : > { %1138 = vmatmul.mubr.bf16.vlgmr.msra.gmra.mrb[0].mxu1 %v819_v12 }
 0x3f3   : > { %v862_v34 = vpop.f32.mrb[0].mxu1 }
 0x3f4   : > { %v868_v35 = vmul.f32 %v862_v34, %v862_v34  ;;  %v1139_v13 = vpop.f32.mrb[1].mxu1  ;;  %v879_v24 = vmul.f32 0.87758255, %v862_v34  ;;  %v1034_v29 = vadd.f32 -0.23971277, %v862_v34  ;;  %v894_v49 = vmul.f32 %v893_v46, %v862_v34 }
 0x3f5   : > { %v865_v37 = vpop.f32.mrb[2].mxu1  ;;  %vm882_vm4 = vcmp.gt.f32.partialorder %v862_v34, -0.87758255 }
 0x3f6   : > { %v869_v36 = vsub.f32 1.0, %v868_v35  ;;  %v1140_v38 = vpop.f32.mrb[3].mxu1 }
 0x3f8   : > { %v870_v39 = vmax.f32 %v869_v36, 0.0 }
 0x3fa   : > { %v871_v40 = vmin.f32 %v870_v39, 1.0 }
 0x3fc   : > { %1273 = vrsqrt.f32 %v871_v40  ;;  %vm874_vm2 = vcmp.eq.f32.partialorder %v871_v40, inf  ;;  %v877_v44 = vand.u32 2147483648, %v871_v40  ;;  %vm876_vm3 = vcmp.eq.f32.partialorder %v871_v40, 0.0 }
 0x406   : > { %v1274_v42 = vpop.eup %1273 }
 0x407   : > { %v873_v43 = vmul.f32 %v1274_v42, %v871_v40 }
 0x409   : > { %v875_v20 = vsel %vm874_vm2, %v871_v40, %v873_v43 }
 0x40a   : > { %v878_v45 = vsel %vm876_vm3, %v877_v44, %v875_v20 }
 0x40b   : > { %v880_v25 = vmul.f32 0.47942555, %v878_v45 }
 0x40d   : > { %v881_v28 = vsub.f32 %v879_v24, %v880_v25 }
 0x40f   : > { %v884_v47 = vsel %vm882_vm4, %v881_v28, %v1034_v29 }
 0x410   : > { %v892_v48 = vmul.f32 %v1035_v21, %v884_v47 }
 0x412   : > { %v895_v50 = vadd.f32 %v894_v49, %v892_v48 }
 0x414   : > { %v896_v51 = vmul.f32 30.0, %v895_v50 }
 0x416   : > { %897 = vst [vmem:[%s248_s10] sm:$0x1] %v896_v51 }
 0x417   : > { %1384 = shalt.err (!%p1381_p3)
}
 0x418   : > { %s1385_s23 = scalar_lea.hbm %s1844_s17, 16  ;;  %s1389_s15 = scalar_lea.hbm %s1895_s5, 32 }
 0x419   : > { %p1386_p9 = scmp.ne.s32.totalorder %s1844_s17, %s1385_s23  ;;  %p1390_p10 = scmp.lt.u32.totalorder %s1844_s17, %s1895_s5 }
 0x41a   : > { %p1391_p12 = scmp.lt.u32.totalorder %s1389_s15, %s1385_s23  ;;  %p1393_p6 = scmp.lt.u32.totalorder %s1385_s23, %s1844_s17 }
 0x41b   : > { %p1387_p11 = pnand %p1386_p9, %p1910_p5 }
 0x41c   : > { %p1392_p1 = por %p1391_p12, %p1390_p10 }
 0x41d   : > { %p1388_p7 = pneg %p1387_p11 }
 0x41e   : > { %p1394_p0 = por %p1393_p6, %p1392_p1 }
 0x420   : > { %p1395_p8 = pnand %p1394_p0, %p1388_p7 }
 0x422   : > { %1398 = shalt.err (!%p1395_p8)
}
 0x423   : > { %1151 = dma.vmem_to_hbm [thread:$0]  (%p1910_p5), %s1846_s20, 16, %s1844_s17, %s899_s13  }
 0x424 PF: > { %s923_s24 = sand.u32 1, %s1431_s28   ;;  %p1911_p13 = scmp.ne.s32.totalorder %s1900_s9, 0 }
 0x425   : > { %p1912_p2 = scmp.ge.s32.totalorder %s1443_s6, 2  ;;  %s924_s25 = scalar_lea.sflag [#allocation7], %s923_s24 }
 0x427   : > { %p1165_p4 = pnand %p1912_p2, %p1911_p13 }
 0x429   : > { %1426 = dma.done.wait (!%p1165_p4), %s924_s25, 16  }
 0x42a   : > { %1428 = vsyncadd (!%p1165_p4), %s924_s25, 4294967280  ;;  %p23_p3 = scmp.ge.s32.totalorder %s1612_s26, 4   ;;  %s1913_s28 = smov %s1435_s29 }
 0x42b   : > { %s1914_s29 = smov %s1439_s30  ;;  %s1915_s30 = smov %s1621_s11 }
 0x42c   : > { %s1916_s6 = smov %s1612_s26  ;;  %25 = sbr.rel (!%p23_p3) target bundleno = 18 (0x12), region = 93 }
 0x433   :  { %928 = vsyncpa [#allocation6], 1 }
 0x434   :  { %930 = vsyncpa [#allocation6 + $0x1], 1 }
 0x435   :  { %931 = vsyncpa [#allocation9], 1 }
 0x436   :  { %932 = vsyncpa [#allocation7], 1 }
 0x437   :  { %934 = vsyncpa [#allocation7 + $0x1], 1 }

</bundles_post_ra>
